<compile_context>
chip_gen: v5e
topology: v5e:2x2
jax: 0.10.0
libtpu: 0.0.40
codegen_flags: <defaults>
</compile_context>

<pallas_src>
import numpy as np
import jax
import jax.numpy as jnp
from jax.experimental import pallas as pl
from jax.experimental.pallas import tpu as pltpu


def _axial_mul_kernel(mask_ref, x_ref, o_ref):
    # mask block is size-1 along every non-axial axis; jnp broadcasting covers
    # both the scalar-per-block and vector-per-block cases.  Upcast happens
    # in-register; output stays in the input's native dtype.
    o_ref[...] = (x_ref[...] * mask_ref[...]).astype(o_ref.dtype)


def _best_tile(extent, cap, quantum):
    """Largest tile for a dim of size `extent`, <= max(cap, quantum), that is a
    multiple of `quantum`; prefers exact divisors of `extent` (even, unmasked
    tiles).  Returns `extent` itself when no tiling is needed/possible."""
    extent = int(extent)
    cap = int(cap)
    quantum = int(quantum)
    if extent <= max(cap, quantum):
        return extent
    cap = max(cap, quantum)
    t = (cap // quantum) * quantum
    fallback = t
    while t >= quantum:
        if extent % t == 0:
            return t
        t -= quantum
    return fallback


def axial_dropout(x, p, dims, key, *,
                  max_block_bytes=4 * 1024 * 1024,
                  vmem_limit_bytes=48 * 1024 * 1024):
    """JAX/Pallas equivalent of AxialDropout(p, dims).forward(x) (training mode)."""
    p = float(p)
    if p == 0.0:
        return x
    if p >= 1.0:
        return jnp.zeros_like(x)
    if isinstance(dims, int):
        dims = [dims]
    # TODO(synk): dims=None with p>0 raises UnboundLocalError in the PyTorch
    # reference (mask used before assignment); we require dims to be given.
    assert dims is not None and len(dims) > 0, "dims must be provided when p > 0"

    nd = x.ndim
    dims = sorted({d % nd for d in dims})
    dset = set(dims)

    # ---- tiny axial dropout mask (== nn.Dropout applied to a ones-mask) -----
    mshape = tuple(x.shape[a] if a in dset else 1 for a in range(nd))
    keep = jax.random.bernoulli(key, 1.0 - p, shape=mshape)
    mask = keep.astype(jnp.float32) * jnp.float32(1.0 / (1.0 - p))

    # ---- merge contiguous trailing non-axial axes (free, lane-dense output) --
    last_d = max(dims)
    tail = list(range(last_d + 1, nd))
    if len(tail) >= 2:
        merged = int(np.prod([x.shape[a] for a in tail]))
        xr = x.reshape(x.shape[: last_d + 1] + (merged,))
        mask = mask.reshape(mshape[: last_d + 1] + (1,))
    else:
        xr = x
    # TODO(synk): when the merged tail is < 128 lanes, folding a leading
    # non-axial axis into the lane dim would need a transpose (non-contiguous);
    # we accept masked stores for those shapes instead.

    if xr.ndim == 1:                 # keep downstream logic >= 2-D
        xr = xr.reshape(1, xr.shape[0])
        mask = mask.reshape(1, mask.shape[0])
        dset = {1}

    S = tuple(xr.shape)
    n = xr.ndim
    mS = tuple(mask.shape)
    itemsize = xr.dtype.itemsize
    total_bytes = int(np.prod(S)) * itemsize
    dims_r = sorted(dset)            # axial dims of the reshaped array

    # Block-byte budget:
    #  (a) keep in+out, double-buffered, comfortably inside every generation's
    #      scoped VMEM (with vmem_limit_bytes raised explicitly below), and
    #  (b) force >= ~8 grid steps for arrays bigger than a few MiB so both v7x
    #      TensorCores stream under the "parallel" dimension semantics.
    eff_max = max(int(max_block_bytes), 1)
    if total_bytes > 4 * 1024 * 1024:
        eff_max = min(eff_max, max(512 * 1024, total_bytes // 8))

    block_x = list(S)
    x_axis_grid = [None] * n         # which grid axis drives each x/out axis
    m_axis_grid = [None] * n         # which grid axis drives each mask axis
    grid = []

    def cur_bytes():
        return int(np.prod(block_x)) * itemsize

    # 1) one grid axis per axial dim outside the last two dims (block size 1;
    #    the mask block index follows it, so one mask value per step).
    for a in dims_r:
        if a < n - 2:
            grid.append(S[a])
            block_x[a] = 1
            x_axis_grid[a] = m_axis_grid[a] = len(grid) - 1

    # 2) tile non-axial leading/middle dims (outside the last two) to budget.
    for a in range(0, max(n - 2, 0)):
        if a in dset or cur_bytes() <= eff_max:
            continue
        unit = cur_bytes() // block_x[a]          # bytes with this axis == 1
        t = _best_tile(S[a], eff_max // unit, 1)
        if t < S[a]:
            block_x[a] = t
            grid.append(pl.cdiv(S[a], t))
            x_axis_grid[a] = len(grid) - 1

    # 3) sublane (second-to-last) dim: tile in multiples of 8 if still too big.
    sl = n - 2
    if cur_bytes() > eff_max and S[sl] > 8:
        unit = cur_bytes() // block_x[sl]
        t = _best_tile(S[sl], eff_max // unit, 8)
        if t < S[sl]:
            block_x[sl] = t
            grid.append(pl.cdiv(S[sl], t))
            x_axis_grid[sl] = len(grid) - 1
            if sl in dset:
                m_axis_grid[sl] = x_axis_grid[sl]

    # 4) lane (last) dim, kept as the innermost (fastest-varying) grid axis:
    #    tile in multiples of 128 (divisor preferred -> unmasked full stores).
    la = n - 1
    if cur_bytes() > eff_max and S[la] > 128:
        unit = cur_bytes() // block_x[la]
        t = _best_tile(S[la], eff_max // unit, 128)
        if t < S[la]:
            block_x[la] = t
            grid.append(pl.cdiv(S[la], t))
            x_axis_grid[la] = len(grid) - 1
            if la in dset:
                m_axis_grid[la] = x_axis_grid[la]

    # mask block: size 1 on non-axial axes; matches x's block on axial axes.
    block_m = tuple(block_x[a] if a in dset else 1 for a in range(n))

    if not grid:                     # whole (small) array fits a single block
        grid = [1]

    def x_index_map(*gi):
        return tuple(gi[x_axis_grid[a]] if x_axis_grid[a] is not None else 0
                     for a in range(n))

    def m_index_map(*gi):
        return tuple(gi[m_axis_grid[a]] if m_axis_grid[a] is not None else 0
                     for a in range(n))

    cost = pl.CostEstimate(
        flops=int(np.prod(S)),
        transcendentals=0,
        bytes_accessed=2 * total_bytes + int(mask.size) * mask.dtype.itemsize,
    )

    out = pl.pallas_call(
        _axial_mul_kernel,
        out_shape=jax.ShapeDtypeStruct(S, xr.dtype),
        grid=tuple(grid),
        in_specs=[
            pl.BlockSpec(block_m, m_index_map),
            pl.BlockSpec(tuple(block_x), x_index_map),
        ],
        out_specs=pl.BlockSpec(tuple(block_x), x_index_map),
        compiler_params=pltpu.CompilerParams(
            dimension_semantics=("parallel",) * len(grid),
            vmem_limit_bytes=int(vmem_limit_bytes)),
        cost_estimate=cost,
    )(mask, xr)

    return out.reshape(x.shape)


def axial_dropout_ref(x, p, dims, key):
    """Pure-JAX reference with identical RNG draws (for testing)."""
    p = float(p)
    if p == 0.0:
        return x
    if p >= 1.0:
        return jnp.zeros_like(x)
    if isinstance(dims, int):
        dims = [dims]
    nd = x.ndim
    dset = {d % nd for d in dims}
    mshape = tuple(x.shape[a] if a in dset else 1 for a in range(nd))
    keep = jax.random.bernoulli(key, 1.0 - p, shape=mshape)
    mask = keep.astype(jnp.float32) * jnp.float32(1.0 / (1.0 - p))
    return (x * mask).astype(x.dtype)


def _check(out, ref):
    np.testing.assert_allclose(np.asarray(out.astype(jnp.float32)),
                               np.asarray(ref.astype(jnp.float32)),
                               rtol=1e-6, atol=1e-6)


if __name__ == "__main__":
    root = jax.random.PRNGKey(0)
    kx, kmask = jax.random.split(root)

    # NCHW input as in the PyTorch module; dims=[1] -> channel-axial dropout.
    B, C, H, W = 2, 4, 16, 16
    x = jax.random.normal(kx, (B, C, H, W), dtype=jnp.float32)
    p, dims = 0.5, [1]

    out = jax.block_until_ready(axial_dropout(x, p, dims, kmask))
    ref = axial_dropout_ref(x, p, dims, kmask)
    assert out.shape == x.shape and out.dtype == x.dtype
    _check(out, ref)

    # Structural check: every channel is either entirely zeroed or entirely
    # scaled by 1/(1-p), identically across batch and spatial positions.
    xn, on = np.asarray(x), np.asarray(out)
    scale = 1.0 / (1.0 - p)
    for c in range(C):
        dropped = np.allclose(on[:, c], 0.0, atol=1e-6)
        kept = np.allclose(on[:, c], xn[:, c] * scale, rtol=1e-5, atol=1e-5)
        assert dropped or kept, f"channel {c}: not a consistent axial pattern"

    # p == 0 path is the identity.
    out0 = jax.block_until_ready(axial_dropout(x, 0.0, dims, kmask))
    assert np.allclose(np.asarray(out0), xn)

    # Axial axes in various positions (axial grid axis, axial sublane/lane axes,
    # non-128-multiple lane extent) against the reference.
    x2 = jax.random.normal(kx, (2, 4, 32, 80), dtype=jnp.float32)
    for dd in ([1], [2, 3], [0, 1], [-1]):
        o = jax.block_until_ready(axial_dropout(x2, 0.25, dd, kmask))
        _check(o, axial_dropout_ref(x2, 0.25, dd, kmask))

    # bf16 input: native-dtype blocks, f32 mask multiply, cast back.
    x2b = x2.astype(jnp.bfloat16)
    ob = jax.block_until_ready(axial_dropout(x2b, 0.25, [1], kmask))
    assert ob.dtype == jnp.bfloat16
    _check(ob, axial_dropout_ref(x2b, 0.25, [1], kmask))

    # Force the completed tiling paths with a small block budget:
    # leading/middle-axis tiles, axial-lane tiling, and 2-D (merged) inputs.
    x3 = jax.random.normal(kx, (2, 3, 8, 512), dtype=jnp.float32)
    for dd, mb in (([1], 64 * 1024), ([3], 8 * 1024), ([0], 32 * 1024)):
        o = jax.block_until_ready(
            axial_dropout(x3, 0.25, dd, kmask, max_block_bytes=mb))
        _check(o, axial_dropout_ref(x3, 0.25, dd, kmask))

    # Multi-MiB input: exercises the >=8-parallel-steps guarantee and large
    # lane-dense blocks under the explicit VMEM limit.
    x4 = jax.random.normal(kx, (4, 8, 32, 2048), dtype=jnp.float32)  # 8 MiB
    o4 = jax.block_until_ready(axial_dropout(x4, 0.5, [1], kmask))
    _check(o4, axial_dropout_ref(x4, 0.5, [1], kmask))

    print("KERNEL_OK")
</pallas_src>

<mosaic_0001>
module attributes {stable_mosaic.version = 11 : i64} {
  func.func @_axial_mul_kernel(%arg0: i32, %arg1: memref<1x4x1xf32, #tpu.memory_space<vmem>>, %arg2: memref<2x4x256xf32, #tpu.memory_space<vmem>>, %arg3: memref<2x4x256xf32, #tpu.memory_space<vmem>>) attributes {dimension_semantics = [#tpu.dimension_semantics<parallel>], iteration_bounds = array<i64: 1>, scalar_prefetch = 0 : i64, scratch_operands = 0 : i64, tpu.core_type = #tpu.core_type<tc>, window_params = [{pipeline_mode = #tpu.pipeline_mode<synchronous>, transform_indices = @transform_0, window_bounds = array<i64: 1, 4, 1>}, {pipeline_mode = #tpu.pipeline_mode<synchronous>, transform_indices = @transform_1, window_bounds = array<i64: 2, 4, 256>}, {pipeline_mode = #tpu.pipeline_mode<synchronous>, transform_indices = @transform_2, window_bounds = array<i64: 2, 4, 256>}]} {
    %c0 = arith.constant 0 : index
    %c0_0 = arith.constant 0 : index
    %c0_1 = arith.constant 0 : index
    %0 = vector.load %arg2[%c0, %c0_0, %c0_1] : memref<2x4x256xf32, #tpu.memory_space<vmem>>, vector<2x4x256xf32>
    %c0_2 = arith.constant 0 : index
    %c0_3 = arith.constant 0 : index
    %c0_4 = arith.constant 0 : index
    %1 = vector.load %arg1[%c0_2, %c0_3, %c0_4] : memref<1x4x1xf32, #tpu.memory_space<vmem>>, vector<1x4x1xf32>
    %2 = vector.broadcast %1 : vector<1x4x1xf32> to vector<2x4x256xf32>
    %3 = arith.mulf %0, %2 : vector<2x4x256xf32>
    %c0_5 = arith.constant 0 : index
    %c0_6 = arith.constant 0 : index
    %c0_7 = arith.constant 0 : index
    %4 = vector.load %arg3[%c0_5, %c0_6, %c0_7] : memref<2x4x256xf32, #tpu.memory_space<vmem>>, vector<2x4x256xf32>
    tpu.vector_store %arg3[%c0_5, %c0_6, %c0_7], %3 {strides = array<i32>} : memref<2x4x256xf32, #tpu.memory_space<vmem>>, vector<2x4x256xf32>,
    return
  }
  func.func @transform_0(%arg0: i32) -> (i32, i32, i32) {
    %c0_i32 = arith.constant 0 : i32
    %c0_i32_0 = arith.constant 0 : i32
    %c0_i32_1 = arith.constant 0 : i32
    %c0_i32_2 = arith.constant 0 : i32
    return %c0_i32, %c0_i32_0, %c0_i32_1 : i32, i32, i32
  }
  func.func @transform_1(%arg0: i32) -> (i32, i32, i32) {
    %c0_i32 = arith.constant 0 : i32
    %c0_i32_0 = arith.constant 0 : i32
    %c0_i32_1 = arith.constant 0 : i32
    %c0_i32_2 = arith.constant 0 : i32
    return %c0_i32, %c0_i32_0, %c0_i32_1 : i32, i32, i32
  }
  func.func @transform_2(%arg0: i32) -> (i32, i32, i32) {
    %c0_i32 = arith.constant 0 : i32
    %c0_i32_0 = arith.constant 0 : i32
    %c0_i32_1 = arith.constant 0 : i32
    %c0_i32_2 = arith.constant 0 : i32
    return %c0_i32, %c0_i32_0, %c0_i32_1 : i32, i32, i32
  }
}

</mosaic_0001>

<bundles_post_ra>
// kernel: tpu_custom_call.1
= control target key start
LH: loop header
LB: loop body
LE: loop exit
PB: predicated region body
PF: predicated region fallthrough
CT: control target
= control target key end

     0   :  { %7 = vsyncpa [#allocation3], 0  ;;  %s152_s0 = inlined_call_operand.vmem [shape: f32[1,4,1], index: 0, kind: input, shape index: {}]   ;;  %s153_s1 = inlined_call_operand.hbm [shape: f32[2,4,256], index: 1, kind: input, shape index: {}]   ;;  %s154_s2 = inlined_call_operand.hbm [shape: f32[2,4,256], index: 2, kind: output, shape index: {}]  }
   0x1   :  { %8 = vsyncpa [#allocation4], 0  ;;  %s15_s11 = sshll.u32 %s153_s1, 4  ;;  %s122_s12 = smov [#allocation2]   ;;  %s16_s11 = int_to_ptr.hbm [resolvable:$true] %s15_s11 }
   0x2   :  { %s17_s13 = sshll.u32 %s122_s12, 4  ;;  %s123_s14 = smov 128   ;;  %s18_s13 = int_to_ptr.vmem [resolvable:$true] %s17_s13 }
   0x3   :  { %s124_s15 = smov 8  }
   0x4   :  { %23 = dma.hbm_to_vmem [thread:$0]  %s16_s11, 256, %s18_s13, [#allocation3], %s123_s14, %s123_s14, %s124_s15  }
   0x5   :  { %118 = dma.done.wait [#allocation3], 256  }
   0x6   :  { %119 = vsyncadd [#allocation3], 4294967040  ;;  %v125_v0 = vmov 0   ;;  %v30_v1 = vld [vmem:[%s152_s0] sm:$0xf]  ;;  %v29_v7 = vld [vmem:[#allocation2 + $0x8] sm:$0xff] }
   0x7   :  { %69 = vset.pattern.permute.xlu0 %v125_v0  ;;  %v126_v2 = vmov 839922192   ;;  %v28_v6 = vld [vmem:[#allocation2] sm:$0xff]  ;;  %s127_s1 = smov [#allocation5]   ;;  %s50_s21 = sshll.u32 %s154_s2, 4  ;;  %s51_s21 = int_to_ptr.hbm [resolvable:$true] %s50_s21 }
   0x8   :  { %33 = vperm.xlu0 %69, %v30_v1   ;;  %v36_v3 = vunpack.c.l.s4 %v126_v2  ;;  %s48_s18 = sshll.u32 %s127_s1, 4  ;;  %s49_s18 = int_to_ptr.vmem [resolvable:$true] %s48_s18 }
   0xa   :  { %v37_v4 = vunpack.c.0.s8 %v36_v3 }
  0x7a   :  { %v34_v5 = vpop.permute.xlu0 %33 }
  0x7b   :  { %v38_v8 = vperm.slane %v34_v5, %v37_v4 }
  0x7d   :  { %v40_v9 = vmul.f32 %v38_v8, %v28_v6  ;;  %v41_v10 = vmul.f32 %v38_v8, %v29_v7 }
  0x7f   :  { %42 = vst [vmem:[#allocation5] sm:$0xff] %v40_v9 }
  0x80   :  { %43 = vst [vmem:[#allocation5 + $0x8] sm:$0xff] %v41_v10 }
  0x81   :  { %56 = dma.vmem_to_hbm [thread:$0]  %s49_s18, 256, %s51_s21, [#allocation4], %s123_s14, %s123_s14, %s124_s15  }
  0x82   :  { %120 = dma.done.wait [#allocation4], 256  }
  0x83   :  { %121 = vsyncadd [#allocation4], 4294967040 }
  0x84   :  { %61 = vsyncpa [#allocation3], 1 }
  0x85   :  { %62 = vsyncpa [#allocation4], 1 }

</bundles_post_ra>
